<compile_context>
chip_gen: v7x
topology: tpu7x:2x2x1
jax: 0.10.0
libtpu: 0.0.40
codegen_flags: <defaults>
</compile_context>

<pallas_src>
from functools import partial

import jax
import jax.numpy as jnp
import numpy as np
from jax.experimental import pallas as pl
from jax.experimental.pallas import tpu as pltpu


def _features_linear_kernel(x_ref, e_ref, rl_ref, tab_ref, bias_ref, o_ref,
                            *, n_strip, compute_dtype):
    # x_ref:    (F, TB)   int32          raw per-field ids, batch on lanes
    # e_ref:    (Np, F)   float32        static field-expansion one-hot (row n -> field_of(n))
    # rl_ref:   (Np, 1)   float32        local id row n must match; -1 on padding rows
    # tab_ref:  (Dp, Np)  compute_dtype  transposed, zero-padded embedding table
    # bias_ref: (Dp, 1)   float32
    # o_ref:    (Dp, TB)  float32        output, batch on lanes (dense vst)
    dp, n_pad = tab_ref.shape
    _, tb = x_ref.shape

    xf = x_ref[...].astype(jnp.float32)                   # (F, TB); ids exact in f32
    acc = jnp.zeros((dp, tb), jnp.float32)

    # Strip-mine the vocab axis so the (strip, TB) intermediates stay bounded.
    for s0 in range(0, n_pad, n_strip):
        s1 = s0 + n_strip
        # fidx[n, b] = x[field_of(n), b]: field gather expressed as a tiny MXU matmul
        # (MXU slot has slack here; avoids ragged sublane shuffles on VPU/XLU).
        fidx = jax.lax.dot_general(
            e_ref[s0:s1, :], xf, (((1,), (0,)), ((), ())),
            preferred_element_type=jnp.float32)            # (n_strip, TB)
        # Single compare: per-field id ranges are disjoint, so row n can only match
        # ids from its own field.  Padding rows have rl = -1 and never match.
        onehot = (fidx == rl_ref[s0:s1, :]).astype(compute_dtype)
        # sum_f table[idx_f] == table_t @ onehot  (LHS-last vs RHS-first: MXU-native).
        acc = acc + jax.lax.dot_general(
            tab_ref[:, s0:s1], onehot, (((1,), (0,)), ((), ())),
            preferred_element_type=jnp.float32)            # (Dp, TB)

    o_ref[...] = (acc + bias_ref[...]).astype(o_ref.dtype)


def features_linear(x, field_dims, weight, bias=None, *, compute_dtype=jnp.float32):
    """out[b] = sum_f weight[x[b, f] + offsets[f]] + bias  ->  (B, D_out) float32.

    x:          (B, F) integer ids, one per field.
    field_dims: static Python list of per-field vocabulary sizes.
    weight:     (sum(field_dims), D_out) embedding table.
    bias:       (D_out,) or None.
    compute_dtype=jnp.bfloat16 uses the native bf16 MXU path (v6e/v7x); keep float32 on v5e.
    """
    field_dims = [int(d) for d in field_dims]
    B, F = x.shape
    N = int(sum(field_dims))
    assert weight.shape[0] == N, (weight.shape, N)
    D_out = int(weight.shape[1])

    # Pad: output dim to sublanes (8), vocab and batch to lanes (128).
    Dp = max(8, pl.cdiv(D_out, 8) * 8)
    Np = max(128, pl.cdiv(N, 128) * 128)
    Bp = pl.cdiv(B, 128) * 128

    # Batch tile <= 512 (VMEM headroom incl. v7x 64 MiB); prefer >= 2 grid steps so the
    # "parallel" axis actually shards across v7x's two TensorCores.
    TB = Bp
    for cand in (512, 256, 128):
        if Bp % cand == 0 and Bp // cand >= 2:
            TB = cand
            break

    # Vocab strip size: bounds the (strip, TB) one-hot working set.
    NSTRIP = Np
    for cand in (512, 256, 128):
        if Np % cand == 0:
            NSTRIP = cand
            break

    offsets = np.concatenate(([0], np.cumsum(field_dims)[:-1])).astype(np.int64)

    # Ids: (F, Bp) int32, batch on lanes.  Padding columns use id 0 (always valid);
    # their outputs are sliced off below.
    xi = x.astype(jnp.int32)
    if Bp != B:
        xi = jnp.pad(xi, ((0, Bp - B), (0, 0)))
    x_t = xi.T

    # Static field-expansion one-hot and per-row local-id map (hoisted iota);
    # padding rows get -1 so they never match (their table columns are zero anyway).
    e_np = np.zeros((Np, F), np.float32)
    rl_np = np.full((Np, 1), -1.0, np.float32)
    for f, fd in enumerate(field_dims):
        o = int(offsets[f])
        e_np[o:o + fd, f] = 1.0
        rl_np[o:o + fd, 0] = np.arange(fd, dtype=np.float32)
    e_mat = jnp.asarray(e_np)
    row_local = jnp.asarray(rl_np)

    # Table stored transposed & lane-dense: (Dp, Np) with the vocab axis on lanes.
    tab_t = jnp.zeros((Dp, Np), compute_dtype).at[:D_out, :N].set(
        jnp.asarray(weight).T.astype(compute_dtype))
    b_vec = (jnp.zeros((D_out,), jnp.float32) if bias is None
             else jnp.asarray(bias).astype(jnp.float32))
    bias_p = jnp.zeros((Dp, 1), jnp.float32).at[:D_out, 0].set(b_vec)

    grid = (Bp // TB,)

    cd_bytes = np.dtype(compute_dtype).itemsize
    f_lanes = 128 * pl.cdiv(F, 128)
    # VMEM estimate (double-buffered operands + strip intermediates), 2x margin,
    # capped at 48 MiB to stay safe on v7x's 64 MiB physical VMEM.
    vmem_need = (
        2 * max(F, 8) * TB * 4        # ids tiles
        + 2 * Np * f_lanes * 4        # field-expansion matrix (lane-padded)
        + 2 * Np * 128 * 4            # local-id map (lane-padded)
        + 2 * Dp * Np * cd_bytes      # table
        + 2 * Dp * 128 * 4            # bias
        + 2 * Dp * TB * 4             # output tiles
        + 4 * NSTRIP * TB * 4         # fidx / one-hot intermediates
    )
    vmem_limit = int(min(max(2 * vmem_need, 8 * 2**20), 48 * 2**20))

    flops = 2 * Np * F * Bp + 2 * Dp * Np * Bp
    bytes_accessed = 4 * (F * Bp + Np * F + Np + Dp * Bp) + cd_bytes * Dp * Np

    kernel = partial(_features_linear_kernel, n_strip=NSTRIP,
                     compute_dtype=compute_dtype)

    out_p = pl.pallas_call(
        kernel,
        out_shape=jax.ShapeDtypeStruct((Dp, Bp), jnp.float32),
        grid_spec=pltpu.PrefetchScalarGridSpec(
            num_scalar_prefetch=0,
            grid=grid,
            in_specs=[
                pl.BlockSpec((F, TB), lambda i: (0, i)),     # ids: tiled over batch
                # Grid-invariant operands: constant index maps => fetched once by the
                # pipeliner.  TODO(synk): pipeline_mode=pl.Buffered(1) would also drop
                # their unused second pipeline buffer; left at default for compatibility.
                pl.BlockSpec((Np, F), lambda i: (0, 0)),     # field-expansion matrix
                pl.BlockSpec((Np, 1), lambda i: (0, 0)),     # local-id map
                pl.BlockSpec((Dp, Np), lambda i: (0, 0)),    # transposed table
                pl.BlockSpec((Dp, 1), lambda i: (0, 0)),     # bias
            ],
            out_specs=pl.BlockSpec((Dp, TB), lambda i: (0, i)),
        ),
        compiler_params=pltpu.CompilerParams(
            dimension_semantics=("parallel",),
            vmem_limit_bytes=vmem_limit,
        ),
        cost_estimate=pl.CostEstimate(
            flops=flops, transcendentals=0, bytes_accessed=bytes_accessed),
    )(x_t, e_mat, row_local, tab_t, bias_p)

    if D_out == 1:
        # Avoid a materialized transpose for the common output_dim == 1 case.
        return out_p[0, :B].reshape(B, 1)
    return out_p[:D_out, :B].T


def _reference(x, field_dims, weight, bias):
    offsets = jnp.asarray(
        np.concatenate(([0], np.cumsum(field_dims)[:-1])).astype(np.int32))
    idx = x.astype(jnp.int32) + offsets[None, :]
    out = jnp.sum(weight[idx], axis=1)
    if bias is not None:
        out = out + bias[None, :]
    return out


if __name__ == "__main__":
    key = jax.random.PRNGKey(0)

    # Config 1: module defaults (output_dim=1, bias=True), tiny batch.
    field_dims = [3, 4, 5, 6]
    output_dim = 1
    B = 8
    F = len(field_dims)
    N = int(sum(field_dims))
    keys = jax.random.split(key, F + 2)
    cols = [jax.random.randint(keys[f], (B, 1), 0, field_dims[f], dtype=jnp.int32)
            for f in range(F)]
    x = jnp.concatenate(cols, axis=1)                       # (B, F) feature ids
    weight = 0.1 * jax.random.normal(keys[F], (N, output_dim), jnp.float32)
    bias = jax.random.normal(keys[F + 1], (output_dim,), jnp.float32)

    out = jax.block_until_ready(features_linear(x, field_dims, weight, bias))
    ref = _reference(x, field_dims, weight, bias)
    assert out.shape == (B, output_dim), out.shape
    assert jnp.allclose(out, ref, atol=1e-5, rtol=1e-5), (out, ref)

    # Config 2: multi-dim output, no bias, batch needing padding and >1 grid step.
    field_dims2 = [5, 7, 11]
    output_dim2 = 4
    B2 = 200
    F2 = len(field_dims2)
    N2 = int(sum(field_dims2))
    keys2 = jax.random.split(jax.random.PRNGKey(1), F2 + 1)
    cols2 = [jax.random.randint(keys2[f], (B2, 1), 0, field_dims2[f], dtype=jnp.int32)
             for f in range(F2)]
    x2 = jnp.concatenate(cols2, axis=1)
    weight2 = 0.1 * jax.random.normal(keys2[F2], (N2, output_dim2), jnp.float32)

    out2 = jax.block_until_ready(features_linear(x2, field_dims2, weight2, None))
    ref2 = _reference(x2, field_dims2, weight2, None)
    assert out2.shape == (B2, output_dim2), out2.shape
    assert jnp.allclose(out2, ref2, atol=1e-5, rtol=1e-5), float(jnp.max(jnp.abs(out2 - ref2)))

    # Config 1 on the bf16 MXU path (v6e/v7x-friendly), looser tolerance for the table cast.
    out_bf16 = jax.block_until_ready(
        features_linear(x, field_dims, weight, bias, compute_dtype=jnp.bfloat16))
    assert jnp.allclose(out_bf16, ref, atol=1e-2, rtol=1e-2), (out_bf16, ref)

    print("KERNEL_OK")
</pallas_src>

<mosaic_0001>
module attributes {stable_mosaic.version = 11 : i64} {
  func.func @_features_linear_kernel(%arg0: i32, %arg1: memref<4x128xi32, #tpu.memory_space<vmem>>, %arg2: memref<128x4xf32, #tpu.memory_space<vmem>>, %arg3: memref<128x1xf32, #tpu.memory_space<vmem>>, %arg4: memref<8x128xf32, #tpu.memory_space<vmem>>, %arg5: memref<8x1xf32, #tpu.memory_space<vmem>>, %arg6: memref<8x128xf32, #tpu.memory_space<vmem>>) attributes {dimension_semantics = [#tpu.dimension_semantics<parallel>], iteration_bounds = array<i64: 1>, scalar_prefetch = 0 : i64, scratch_operands = 0 : i64, tpu.core_type = #tpu.core_type<tc>, window_params = [{transform_indices = @transform_0, window_bounds = array<i64: 4, 128>}, {pipeline_mode = #tpu.pipeline_mode<synchronous>, transform_indices = @transform_1, window_bounds = array<i64: 128, 4>}, {pipeline_mode = #tpu.pipeline_mode<synchronous>, transform_indices = @transform_2, window_bounds = array<i64: 128, 1>}, {pipeline_mode = #tpu.pipeline_mode<synchronous>, transform_indices = @transform_3, window_bounds = array<i64: 8, 128>}, {pipeline_mode = #tpu.pipeline_mode<synchronous>, transform_indices = @transform_4, window_bounds = array<i64: 8, 1>}, {transform_indices = @transform_5, window_bounds = array<i64: 8, 128>}]} {
    %c0 = arith.constant 0 : index
    %c0_0 = arith.constant 0 : index
    %0 = vector.load %arg1[%c0, %c0_0] : memref<4x128xi32, #tpu.memory_space<vmem>>, vector<4x128xi32>
    %1 = arith.sitofp %0 : vector<4x128xi32> to vector<4x128xf32>
    %cst = arith.constant 0.000000e+00 : f32
    %2 = vector.broadcast %cst : f32 to vector<8x128xf32>
    %c0_1 = arith.constant 0 : index
    %c0_2 = arith.constant 0 : index
    %3 = vector.load %arg2[%c0_1, %c0_2] : memref<128x4xf32, #tpu.memory_space<vmem>>, vector<128x4xf32>
    %cst_3 = arith.constant dense<0.000000e+00> : vector<128x128xf32>
    %4 = tpu.matmul %3, %1, %cst_3 {dimension_numbers = #tpu.dot_dimension_numbers<[1], [0], [0], [1], [0, 0, 1, 1], [], []>} : vector<128x4xf32>, vector<4x128xf32>, vector<128x128xf32> -> vector<128x128xf32>
    %c0_4 = arith.constant 0 : index
    %c0_5 = arith.constant 0 : index
    %5 = vector.load %arg3[%c0_4, %c0_5] : memref<128x1xf32, #tpu.memory_space<vmem>>, vector<128x1xf32>
    %6 = vector.broadcast %5 : vector<128x1xf32> to vector<128x128xf32>
    %7 = arith.cmpf oeq, %4, %6 : vector<128x128xf32>
    %8 = arith.extui %7 : vector<128x128xi1> to vector<128x128xi32>
    %9 = arith.sitofp %8 : vector<128x128xi32> to vector<128x128xf32>
    %c0_6 = arith.constant 0 : index
    %c0_7 = arith.constant 0 : index
    %10 = vector.load %arg4[%c0_6, %c0_7] : memref<8x128xf32, #tpu.memory_space<vmem>>, vector<8x128xf32>
    %cst_8 = arith.constant dense<0.000000e+00> : vector<8x128xf32>
    %11 = tpu.matmul %10, %9, %cst_8 {dimension_numbers = #tpu.dot_dimension_numbers<[1], [0], [0], [1], [0, 0, 1, 1], [], []>} : vector<8x128xf32>, vector<128x128xf32>, vector<8x128xf32> -> vector<8x128xf32>
    %12 = arith.addf %2, %11 : vector<8x128xf32>
    %c0_9 = arith.constant 0 : index
    %c0_10 = arith.constant 0 : index
    %13 = vector.load %arg5[%c0_9, %c0_10] : memref<8x1xf32, #tpu.memory_space<vmem>>, vector<8x1xf32>
    %14 = vector.broadcast %13 : vector<8x1xf32> to vector<8x128xf32>
    %15 = arith.addf %12, %14 : vector<8x128xf32>
    %c0_11 = arith.constant 0 : index
    %c0_12 = arith.constant 0 : index
    %16 = vector.load %arg6[%c0_11, %c0_12] : memref<8x128xf32, #tpu.memory_space<vmem>>, vector<8x128xf32>
    tpu.vector_store %arg6[%c0_11, %c0_12], %15 {strides = array<i32>} : memref<8x128xf32, #tpu.memory_space<vmem>>, vector<8x128xf32>,
    return
  }
  func.func @transform_0(%arg0: i32) -> (i32, i32) {
    %c0_i32 = arith.constant 0 : i32
    %c0_i32_0 = arith.constant 0 : i32
    return %c0_i32, %arg0 : i32, i32
  }
  func.func @transform_1(%arg0: i32) -> (i32, i32) {
    %c0_i32 = arith.constant 0 : i32
    %c0_i32_0 = arith.constant 0 : i32
    %c0_i32_1 = arith.constant 0 : i32
    return %c0_i32, %c0_i32_0 : i32, i32
  }
  func.func @transform_2(%arg0: i32) -> (i32, i32) {
    %c0_i32 = arith.constant 0 : i32
    %c0_i32_0 = arith.constant 0 : i32
    %c0_i32_1 = arith.constant 0 : i32
    return %c0_i32, %c0_i32_0 : i32, i32
  }
  func.func @transform_3(%arg0: i32) -> (i32, i32) {
    %c0_i32 = arith.constant 0 : i32
    %c0_i32_0 = arith.constant 0 : i32
    %c0_i32_1 = arith.constant 0 : i32
    return %c0_i32, %c0_i32_0 : i32, i32
  }
  func.func @transform_4(%arg0: i32) -> (i32, i32) {
    %c0_i32 = arith.constant 0 : i32
    %c0_i32_0 = arith.constant 0 : i32
    %c0_i32_1 = arith.constant 0 : i32
    return %c0_i32, %c0_i32_0 : i32, i32
  }
  func.func @transform_5(%arg0: i32) -> (i32, i32) {
    %c0_i32 = arith.constant 0 : i32
    %c0_i32_0 = arith.constant 0 : i32
    return %c0_i32, %arg0 : i32, i32
  }
}

</mosaic_0001>

<bundles_post_ra>
// kernel: tpu_custom_call.1
= control target key start
LH: loop header
LB: loop body
LE: loop exit
PB: predicated region body
PF: predicated region fallthrough
CT: control target
= control target key end

     0   :  { %vm88_vm0 = vcmask 1043456   ;;  %vm39_vm1 = vcmask 31744   ;;  %v673_v4 = vmov 0   ;;  %s850_s0 = inlined_call_operand.vmem [shape: s32[4,128], index: 0, kind: input, shape index: {}]   ;;  %s851_s1 = inlined_call_operand.vmem [shape: f32[128,4], index: 1, kind: input, shape index: {}]   ;;  %s852_s2 = inlined_call_operand.vmem [shape: f32[128,1], index: 2, kind: input, shape index: {}]   ;;  %s853_s3 = inlined_call_operand.vmem [shape: f32[8,128], index: 3, kind: input, shape index: {}]   ;;  %s854_s4 = inlined_call_operand.vmem [shape: f32[8,1], index: 4, kind: input, shape index: {}]   ;;  %s855_s5 = inlined_call_operand.hbm [shape: f32[8,128], index: 5, kind: output, shape index: {}]  }
   0x1   :  { %v21_v0 = vld [vmem:[%s850_s0] sm:$0xf]  ;;  %v24_v3 = vld [vmem:[%s851_s1 + $0x8] sm:$0xff]  ;;  %647 = vset.pattern.permute.xlu0 %v673_v4  ;;  %648 = vset.pattern.permute.xlu1 %v673_v4  ;;  %v25_v5 = vld [vmem:[%s851_s1 + $0x10] sm:$0xff] }
   0x2   :  { %v23_v1 = vld [vmem:[%s851_s1] sm:$0xff]  ;;  %v22_v2 = vcvt.s32.f32 %v21_v0  ;;  %v26_v7 = vld [vmem:[%s851_s1 + $0x18] sm:$0xff]  ;;  %v239_v8 = vld [vmem:[%s852_s2 + $0x10] sm:$0xff] }
   0x3   :  { %558 = vmatprep.mubr.msk.f32.mxu0 %vm39_vm1, %v23_v1  ;;  %v237_v6 = vld [vmem:[%s852_s2] sm:$0xff]  ;;  %v238_v10 = vld [vmem:[%s852_s2 + $0x8] sm:$0xff]  ;;  %265 = vperm.xlu1 %648, %v239_v8   ;;  %v240_v11 = vld [vmem:[%s852_s2 + $0x18] sm:$0xff] }
   0x4   :  { %556 = vmatprep.subr.msk.mxu0 %vm88_vm0, %v22_v2  ;;  %255 = vperm.xlu0 %647, %v237_v6   ;;  %v27_v9 = vld [vmem:[%s851_s1 + $0x20] sm:$0xff]  ;;  %v28_v12 = vld [vmem:[%s851_s1 + $0x28] sm:$0xff]  ;;  %v29_v13 = vld [vmem:[%s851_s1 + $0x30] sm:$0xff] }
   0x5   :  { %557 = vmatpush3.msk.msra.mxu0 %vm88_vm0, %v22_v2  ;;  %v241_v14 = vld [vmem:[%s852_s2 + $0x20] sm:$0xff] }
   0x6   :  { %559 = vmatmul.mubr.msk.f32.vlgmr.msra.gmra.mrb[0].mxu0 %vm39_vm1, %v24_v3 }
   0x7   :  { %561 = vmatprep.mubr.msk.f32.mxu0 %vm39_vm1, %v25_v5  ;;  %270 = vperm.xlu1 %648, %v240_v11  }
   0x8   :  { %260 = vperm.xlu0 %647, %v238_v10  }
   0xa   :  { %562 = vmatmul.mubr.msk.f32.gmra.mrb[2].mxu0 %vm39_vm1, %v26_v7 }
   0xb   :  { %564 = vmatprep.mubr.msk.f32.mxu0 %vm39_vm1, %v27_v9 }
   0xc   :  { %10 = vsyncpa [#allocation3], 0  ;;  %v242_v15 = vld [vmem:[%s852_s2 + $0x28] sm:$0xff]  ;;  %v30_v16 = vld [vmem:[%s851_s1 + $0x38] sm:$0xff]  ;;  %275 = vperm.xlu0 %647, %v241_v14   ;;  %v674_v36 = vmov 0.0|0.0   ;;  %vm675_vm2 = vmmov 0  }
   0xd   :  { %v31_v17 = vld [vmem:[%s851_s1 + $0x40] sm:$0xff]  ;;  %v243_v18 = vld [vmem:[%s852_s2 + $0x30] sm:$0xff]  ;;  %280 = vperm.xlu1 %648, %v242_v15   ;;  %v244_v19 = vld [vmem:[%s852_s2 + $0x38] sm:$0xff]  ;;  %617 = vmatprep.subr.bf16.mxu1 %v674_v36  ;;  %v676_v37 = vmov 0.0   ;;  %v677_v48 = vmov 1.0|1.0  }
   0xe   :  { %565 = vmatmul.mubr.msk.f32.gmra.mrb[4].mxu0 %vm39_vm1, %v28_v12  ;;  %v32_v20 = vld [vmem:[%s851_s1 + $0x48] sm:$0xff]  ;;  %v33_v21 = vld [vmem:[%s851_s1 + $0x50] sm:$0xff]  ;;  %v245_v22 = vld [vmem:[%s852_s2 + $0x40] sm:$0xff]  ;;  %614 = vmatprep.mubr.msk.f32.mxu1 %vm675_vm2, %v676_v37 }
   0xf   :  { %567 = vmatprep.mubr.msk.f32.mxu0 %vm39_vm1, %v29_v13  ;;  %v246_v23 = vld [vmem:[%s852_s2 + $0x48] sm:$0xff]  ;;  %v34_v24 = vld [vmem:[%s851_s1 + $0x58] sm:$0xff]  ;;  %v35_v25 = vld [vmem:[%s851_s1 + $0x60] sm:$0xff] }
  0x10   :  { %285 = vperm.xlu0 %647, %v243_v18   ;;  %v247_v26 = vld [vmem:[%s852_s2 + $0x50] sm:$0xff]  ;;  %v248_v27 = vld [vmem:[%s852_s2 + $0x58] sm:$0xff]  ;;  %v36_v28 = vld [vmem:[%s851_s1 + $0x68] sm:$0xff] }
  0x11   :  { %290 = vperm.xlu1 %648, %v244_v19   ;;  %v37_v29 = vld [vmem:[%s851_s1 + $0x70] sm:$0xff]  ;;  %v249_v30 = vld [vmem:[%s852_s2 + $0x60] sm:$0xff]  ;;  %v250_v31 = vld [vmem:[%s852_s2 + $0x68] sm:$0xff] }
  0x12   :  { %568 = vmatmul.mubr.msk.f32.gmra.mrb[6].mxu0 %vm39_vm1, %v30_v16  ;;  %v38_v32 = vld [vmem:[%s851_s1 + $0x78] sm:$0xff]  ;;  %v251_v33 = vld [vmem:[%s852_s2 + $0x70] sm:$0xff]  ;;  %v382_v35 = vld [vmem:[%s854_s4] sm:$0xff]  ;;  %s678_s4 = smov [#allocation2]  }
  0x13   :  { %570 = vmatprep.mubr.msk.f32.mxu0 %vm39_vm1, %v31_v17  ;;  %v252_v34 = vld [vmem:[%s852_s2 + $0x78] sm:$0xff]  ;;  %v381_v7 = vld [vmem:[%s853_s3] sm:$0xff]  ;;  %s465_s8 = sshll.u32 %s678_s4, 4  ;;  %s466_s8 = int_to_ptr.vmem [resolvable:$true] %s465_s8 }
  0x14   :  { %295 = vperm.xlu0 %647, %v245_v22   ;;  %s649_s9 = scalar_lea.vmem %s466_s8, 128  ;;  %p654_p1 = scmp.lt.s32.totalorder %s466_s8, %s466_s8 }
  0x15   :  { %300 = vperm.xlu1 %648, %v246_v23   ;;  %p650_p0 = scmp.ne.s32.totalorder %s466_s8, %s649_s9  ;;  %p655_p2 = scmp.lt.s32.totalorder %s649_s9, %s649_s9 }
  0x16   :  { %571 = vmatmul.mubr.msk.f32.gmra.mrb[8].mxu0 %vm39_vm1, %v32_v20 }
  0x17   :  { %573 = vmatprep.mubr.msk.f32.mxu0 %vm39_vm1, %v33_v21  ;;  %p656_p3 = por %p655_p2, %p654_p1 }
  0x18   :  { %305 = vperm.xlu0 %647, %v247_v26  }
  0x19   :  { %310 = vperm.xlu1 %648, %v248_v27   ;;  %p657_p4 = pnand %p656_p3, %p650_p0 }
  0x1a   :  { %574 = vmatmul.mubr.msk.f32.gmra.mrb[10].mxu0 %vm39_vm1, %v34_v24 }
  0x1b   :  { %576 = vmatprep.mubr.msk.f32.mxu0 %vm39_vm1, %v35_v25 }
  0x1c   :  { %315 = vperm.xlu0 %647, %v249_v30  }
  0x1d   :  { %320 = vperm.xlu1 %648, %v250_v31  }
  0x1e   :  { %577 = vmatmul.mubr.msk.f32.gmra.mrb[12].mxu0 %vm39_vm1, %v36_v28 }
  0x1f   :  { %579 = vmatprep.mubr.msk.f32.mxu0 %vm39_vm1, %v37_v29 }
  0x20   :  { %325 = vperm.xlu0 %647, %v251_v33  }
  0x21   :  { %330 = vperm.xlu1 %648, %v252_v34  }
  0x22   :  { %580 = vmatmul.mubr.msk.f32.gmra.mrb[14].mxu0 %vm39_vm1, %v38_v32 }
  0x24   :  { %385 = vperm.xlu0 %647, %v382_v35  }
  0x82   :  { %v266_v38 = vpop.permute.xlu1 %265 }
  0x83   :  { %v256_v39 = vpop.permute.xlu0 %255 }
  0x86   :  { %v271_v40 = vpop.permute.xlu1 %270 }
  0x87   :  { %v261_v41 = vpop.permute.xlu0 %260 }
  0x8b   :  { %v276_v43 = vpop.permute.xlu0 %275 }
  0x8c   :  { %v281_v42 = vpop.permute.xlu1 %280 }
  0x8f   :  { %v286_v49 = vpop.permute.xlu0 %285 }
  0x90   :  { %v291_v46 = vpop.permute.xlu1 %290 }
  0x93   :  { %v296_v54 = vpop.permute.xlu0 %295 }
  0x94   :  { %v301_v53 = vpop.permute.xlu1 %300 }
  0x97   :  { %v306_v59 = vpop.permute.xlu0 %305 }
  0x98   :  { %v311_v57 = vpop.permute.xlu1 %310 }
  0x9b   :  { %v316_v0 = vpop.permute.xlu0 %315 }
  0x9c   :  { %v321_v63 = vpop.permute.xlu1 %320 }
  0x9f   :  { %v326_v5 = vpop.permute.xlu0 %325 }
  0xa0   :  { %v331_v3 = vpop.permute.xlu1 %330 }
  0xa3   :  { %v386_v8 = vpop.permute.xlu0 %385 }
  0xd9   :  { %v560_v44 = vpop.f32.mrb[0].mxu0 }
  0xda   :  { %vm334_vm3 = vcmp.eq.f32.partialorder %v560_v44, %v261_v41  ;;  %v158_v45 = vpop.f32.mrb[1].mxu0 }
  0xdb   :  { %vm333_vm4 = vcmp.eq.f32.partialorder %v158_v45, %v256_v39 }
  0xdc   :  { %vm618_vm5 = vmpackc.low %vm334_vm3, %vm333_vm4 }
  0xdd   :  { %v563_v47 = vpop.f32.mrb[2].mxu0  ;;  %619 = vmatpush3.bf16.msk.msra.mxu1 %vm618_vm5, %v677_v48 }
  0xde   :  { %vm336_vm6 = vcmp.eq.f32.partialorder %v563_v47, %v271_v40  ;;  %v168_v50 = vpop.f32.mrb[3].mxu0  ;;  %620 = vmatprep.subr.bf16.mxu1 %v674_v36 }
  0xdf   :  { %vm335_vm7 = vcmp.eq.f32.partialorder %v168_v50, %v266_v38 }
  0xe0   :  { %vm621_vm8 = vmpackc.low %vm336_vm6, %vm335_vm7 }
  0xe1   :  { %v566_v51 = vpop.f32.mrb[4].mxu0  ;;  %622 = vmatpush3.bf16.msk.msra.mxu1 %vm621_vm8, %v677_v48 }
  0xe2   :  { %vm338_vm9 = vcmp.eq.f32.partialorder %v566_v51, %v281_v42  ;;  %v178_v52 = vpop.f32.mrb[5].mxu0  ;;  %623 = vmatprep.subr.bf16.mxu1 %v674_v36 }
  0xe3   :  { %vm337_vm10 = vcmp.eq.f32.partialorder %v178_v52, %v276_v43 }
  0xe4   :  { %vm624_vm11 = vmpackc.low %vm338_vm9, %vm337_vm10 }
  0xe5   :  { %v569_v55 = vpop.f32.mrb[6].mxu0  ;;  %625 = vmatpush3.bf16.msk.msra.mxu1 %vm624_vm11, %v677_v48 }
  0xe6   :  { %vm340_vm12 = vcmp.eq.f32.partialorder %v569_v55, %v291_v46  ;;  %v188_v56 = vpop.f32.mrb[7].mxu0  ;;  %626 = vmatprep.subr.bf16.mxu1 %v674_v36 }
  0xe7   :  { %vm339_vm13 = vcmp.eq.f32.partialorder %v188_v56, %v286_v49 }
  0xe8   :  { %vm627_vm14 = vmpackc.low %vm340_vm12, %vm339_vm13 }
  0xe9   :  { %v572_v58 = vpop.f32.mrb[8].mxu0  ;;  %628 = vmatpush3.bf16.msk.msra.mxu1 %vm627_vm14, %v677_v48 }
  0xea   :  { %vm342_vm15 = vcmp.eq.f32.partialorder %v572_v58, %v301_v53  ;;  %v198_v60 = vpop.f32.mrb[9].mxu0  ;;  %629 = vmatprep.subr.bf16.mxu1 %v674_v36 }
  0xeb   :  { %vm341_vm0 = vcmp.eq.f32.partialorder %v198_v60, %v296_v54 }
  0xec   :  { %vm630_vm1 = vmpackc.low %vm342_vm15, %vm341_vm0 }
  0xed   :  { %v575_v61 = vpop.f32.mrb[10].mxu0  ;;  %631 = vmatpush3.bf16.msk.msra.mxu1 %vm630_vm1, %v677_v48 }
  0xee   :  { %vm344_vm2 = vcmp.eq.f32.partialorder %v575_v61, %v311_v57  ;;  %v208_v62 = vpop.f32.mrb[11].mxu0  ;;  %632 = vmatprep.subr.bf16.mxu1 %v674_v36 }
  0xef   :  { %vm343_vm3 = vcmp.eq.f32.partialorder %v208_v62, %v306_v59 }
  0xf0   :  { %vm633_vm4 = vmpackc.low %vm344_vm2, %vm343_vm3 }
  0xf1   :  { %v578_v1 = vpop.f32.mrb[12].mxu0  ;;  %634 = vmatpush3.bf16.msk.msra.mxu1 %vm633_vm4, %v677_v48 }
  0xf2   :  { %vm346_vm5 = vcmp.eq.f32.partialorder %v578_v1, %v321_v63  ;;  %v218_v2 = vpop.f32.mrb[13].mxu0  ;;  %635 = vmatprep.subr.bf16.mxu1 %v674_v36 }
  0xf3   :  { %vm345_vm6 = vcmp.eq.f32.partialorder %v218_v2, %v316_v0 }
  0xf4   :  { %vm636_vm7 = vmpackc.low %vm346_vm5, %vm345_vm6 }
  0xf5   :  { %v581_v4 = vpop.f32.mrb[14].mxu0  ;;  %637 = vmatpush3.bf16.msk.msra.mxu1 %vm636_vm7, %v677_v48 }
  0xf6   :  { %vm348_vm8 = vcmp.eq.f32.partialorder %v581_v4, %v331_v3  ;;  %v228_v6 = vpop.f32.mrb[15].mxu0  ;;  %638 = vmatprep.subr.bf16.mxu1 %v674_v36 }
  0xf7   :  { %vm347_vm9 = vcmp.eq.f32.partialorder %v228_v6, %v326_v5 }
  0xf8   :  { %vm639_vm10 = vmpackc.low %vm348_vm8, %vm347_vm9 }
  0xf9   :  { %640 = vmatpush3.bf16.msk.msra.mxu1 %vm639_vm10, %v677_v48 }
  0xfc   :  { %615 = vmatmul.mubr.f32.vlgmr.msra.gmra.mrb[0].mxu1 %v381_v7 }
 0x1cf   :  { %v454_v9 = vpop.f32.mrb[0].mxu1 }
 0x1d0   :  { %v455_v10 = vadd.f32 %v454_v9, %v386_v8  ;;  %v616_v11 = vpop.f32.mrb[1].mxu1 }
 0x1d2   :  { %458 = vst [vmem:[#allocation2] sm:$0xff] %v455_v10 }
 0x1d3   :  { %660 = shalt.err (!%p657_p4)
}
 0x1d4   :  { %s661_s3 = scalar_lea.hbm %s855_s5, 128 }
 0x1d5   :  { %p662_p5 = scmp.ne.s32.totalorder %s855_s5, %s661_s3  ;;  %p665_p6 = scmp.lt.u32.totalorder %s661_s3, %s855_s5 }
 0x1d7   :  { %p667_p7 = pnand %p665_p6, %p662_p5 }
 0x1d9   :  { %670 = shalt.err (!%p667_p7)
}
 0x1da   :  { %468 = dma.vmem_to_hbm [thread:$0]  %s466_s8, 128, %s855_s5, [#allocation3]  }
 0x1db   :  { %671 = dma.done.wait [#allocation3], 128  }
 0x1dc   :  { %672 = vsyncadd [#allocation3], 4294967168 }
 0x1dd   :  { %472 = vsyncpa [#allocation3], 1 }

</bundles_post_ra>
